<compile_context>
chip_gen: v7x
topology: tpu7x:2x2x1
jax: 0.10.0
libtpu: 0.0.40
codegen_flags: <defaults>
</compile_context>

<pallas_src>
import functools

import jax
import jax.numpy as jnp
from jax.experimental import pallas as pl
from jax.experimental.pallas import tpu as pltpu


def _make_mlp_kernel(num_layers, transpose_out):
    """Kernel body: x_ref, w0_ref, ..., w{L-1}_ref, o_ref."""

    def kernel(x_ref, *refs):
        w_refs = refs[:num_layers]
        o_ref = refs[num_layers]
        h = x_ref[...]  # keep native dtype (f32 or bf16) for the MXU
        for l in range(num_layers):
            h = jnp.dot(
                h,
                w_refs[l][...],
                preferred_element_type=jnp.float32,  # f32 accumulate
            )
            if l != num_layers - 1:
                h = jnp.maximum(h, 0.0)  # ReLU in f32
                # Feed the next matmul in the weights' (possibly bf16) dtype.
                nxt = w_refs[l + 1].dtype
                if nxt != jnp.float32:
                    h = h.astype(nxt)
        if transpose_out:
            # Lane-dense store: batch dim on the 128 lanes (rides the XLU).
            o_ref[...] = h.T.astype(o_ref.dtype)
        else:
            o_ref[...] = h.astype(o_ref.dtype)

    return kernel


def _round_up(v, m):
    return -(-v // m) * m


def _auto_block_rows(n):
    """Large tiles to amortize per-step overhead; multiples of 128 rows."""
    target = 4096  # ~1-3 MiB of VMEM per buffer at these feature widths
    if n <= target:
        return max(128, _round_up(n, 128))
    # Keep >= 2 grid steps so the "parallel" row axis can shard across the
    # 2 TensorCores of a v7x chip.
    steps = max(2, -(-n // target))
    return _round_up(-(-n // steps), 128)


@functools.partial(jax.jit, static_argnames=("block_rows", "output_layout"))
def mlp_pallas(x, weights, *, block_rows=None, output_layout="nd"):
    """Forward pass of MLP (no-bias Linear stack with ReLU between layers).

    x:              (N, dim_in)
    weights:        tuple of (fan_in, fan_out) matrices, length == num_layers
    block_rows:     rows per grid step (None => auto, multiples of 128)
    output_layout:  "nd" -> (N, dim_out)  (matches the PyTorch module)
                    "dn" -> (dim_out, N)  (lane-dense; for fused consumers)
    """
    num_layers = len(weights)
    n, dim_in = x.shape
    dim_out = weights[-1].shape[1]

    if block_rows is None:
        block_rows = _auto_block_rows(n)

    # Pad the ragged batch tail with zero rows (no bias => zero outputs there),
    # then slice the result back to N.
    n_pad = _round_up(n, block_rows)
    if n_pad != n:
        x = jnp.pad(x, ((0, n_pad - n), (0, 0)))

    grid = (n_pad // block_rows,)
    transpose_out = output_layout == "dn"
    kernel = _make_mlp_kernel(num_layers, transpose_out)

    # x tiled over rows; each weight is one full block with a constant
    # index_map, so the pipeline keeps it resident in VMEM across grid steps
    # (no per-step re-DMA).
    in_specs = [pl.BlockSpec((block_rows, dim_in), lambda i: (i, 0))]
    for w in weights:
        in_specs.append(pl.BlockSpec(w.shape, lambda i: (0, 0)))

    if transpose_out:
        out_shape = jax.ShapeDtypeStruct((dim_out, n_pad), x.dtype)
        out_spec = pl.BlockSpec((dim_out, block_rows), lambda i: (0, i))
    else:
        out_shape = jax.ShapeDtypeStruct((n_pad, dim_out), x.dtype)
        out_spec = pl.BlockSpec((block_rows, dim_out), lambda i: (i, 0))

    # Advisory cost estimate so XLA can overlap this custom call with its
    # neighbours in the surrounding pipeline.
    flops = 2 * n_pad * sum(int(w.shape[0]) * int(w.shape[1]) for w in weights)
    bytes_accessed = (
        n_pad * dim_in * x.dtype.itemsize
        + n_pad * dim_out * x.dtype.itemsize
        + sum(int(w.size) * w.dtype.itemsize for w in weights)
    )
    cost = pl.CostEstimate(
        flops=flops, transcendentals=0, bytes_accessed=int(bytes_accessed)
    )

    out = pl.pallas_call(
        kernel,
        out_shape=out_shape,
        grid_spec=pltpu.PrefetchScalarGridSpec(
            num_scalar_prefetch=0,
            grid=grid,
            in_specs=in_specs,
            out_specs=out_spec,
        ),
        compiler_params=pltpu.CompilerParams(
            dimension_semantics=("parallel",)
        ),
        cost_estimate=cost,
    )(x, *weights)

    if transpose_out:
        return out[:, :n]
    return out[:n]


def init_mlp_params(key, dim_in, dim_out, dim_hidden, num_layers, dtype=jnp.float32):
    """Deterministic synthetic init matching nn.Linear(bias=False) shapes.

    Layer l: in  = dim_in  if l == 0               else dim_hidden
             out = dim_out if l == num_layers - 1  else dim_hidden
    Stored as (in, out) so the kernel does x @ W.
    """
    weights = []
    for l in range(num_layers):
        fan_in = dim_in if l == 0 else dim_hidden
        fan_out = dim_out if l == num_layers - 1 else dim_hidden
        key, sub = jax.random.split(key)
        bound = 1.0 / (fan_in ** 0.5)
        w = jax.random.uniform(
            sub, (fan_in, fan_out), dtype=dtype, minval=-bound, maxval=bound
        )
        weights.append(w)
    return tuple(weights)


def mlp_reference(x, weights):
    """Pure-JAX reference of the PyTorch forward."""
    h = x
    num_layers = len(weights)
    for l, w in enumerate(weights):
        h = h @ w
        if l != num_layers - 1:
            h = jnp.maximum(h, 0.0)
    return h


if __name__ == "__main__":
    # Small shapes consistent with the module (MLP over a batch of point
    # features, as in the NeRF triplane network). N is deliberately NOT a
    # multiple of the tile size to exercise the ragged-tail padding path.
    dim_in, dim_out, dim_hidden, num_layers = 32, 16, 64, 3
    n = 200

    key = jax.random.PRNGKey(0)
    kx, kw = jax.random.split(key)
    x = jax.random.normal(kx, (n, dim_in), dtype=jnp.float32)
    weights = init_mlp_params(kw, dim_in, dim_out, dim_hidden, num_layers)

    ref = mlp_reference(x, weights)

    # 1) Default layout (matches PyTorch module semantics), f32.
    out = jax.block_until_ready(mlp_pallas(x, weights))
    assert out.shape == (n, dim_out), out.shape
    assert jnp.allclose(out, ref, atol=1e-4, rtol=1e-4), "f32 nd mismatch"

    # 2) Lane-dense "dn" layout (batch on lanes) for fused consumers.
    out_t = jax.block_until_ready(mlp_pallas(x, weights, output_layout="dn"))
    assert out_t.shape == (dim_out, n), out_t.shape
    assert jnp.allclose(out_t.T, ref, atol=1e-4, rtol=1e-4), "f32 dn mismatch"

    # 3) bf16 inputs/weights (halved HBM traffic), f32 accumulation on MXU.
    xb = x.astype(jnp.bfloat16)
    wb = tuple(w.astype(jnp.bfloat16) for w in weights)
    out_bf = jax.block_until_ready(mlp_pallas(xb, wb))
    ref_bf = mlp_reference(
        xb.astype(jnp.float32), tuple(w.astype(jnp.float32) for w in wb)
    )
    assert out_bf.shape == (n, dim_out), out_bf.shape
    assert jnp.allclose(
        out_bf.astype(jnp.float32), ref_bf, atol=5e-2, rtol=5e-2
    ), "bf16 mismatch"

    print("KERNEL_OK")
</pallas_src>

<mosaic_0001>
module attributes {stable_mosaic.version = 11 : i64} {
  func.func @kernel(%arg0: i32, %arg1: memref<256x32xf32, #tpu.memory_space<vmem>>, %arg2: memref<32x64xf32, #tpu.memory_space<vmem>>, %arg3: memref<64x64xf32, #tpu.memory_space<vmem>>, %arg4: memref<64x16xf32, #tpu.memory_space<vmem>>, %arg5: memref<256x16xf32, #tpu.memory_space<vmem>>) attributes {dimension_semantics = [#tpu.dimension_semantics<parallel>], iteration_bounds = array<i64: 1>, scalar_prefetch = 0 : i64, scratch_operands = 0 : i64, tpu.core_type = #tpu.core_type<tc>, window_params = [{transform_indices = @transform_0, window_bounds = array<i64: 256, 32>}, {pipeline_mode = #tpu.pipeline_mode<synchronous>, transform_indices = @transform_1, window_bounds = array<i64: 32, 64>}, {pipeline_mode = #tpu.pipeline_mode<synchronous>, transform_indices = @transform_2, window_bounds = array<i64: 64, 64>}, {pipeline_mode = #tpu.pipeline_mode<synchronous>, transform_indices = @transform_3, window_bounds = array<i64: 64, 16>}, {transform_indices = @transform_4, window_bounds = array<i64: 256, 16>}]} {
    %c0 = arith.constant 0 : index
    %c0_0 = arith.constant 0 : index
    %0 = vector.load %arg1[%c0, %c0_0] : memref<256x32xf32, #tpu.memory_space<vmem>>, vector<256x32xf32>
    %c0_1 = arith.constant 0 : index
    %c0_2 = arith.constant 0 : index
    %1 = vector.load %arg2[%c0_1, %c0_2] : memref<32x64xf32, #tpu.memory_space<vmem>>, vector<32x64xf32>
    %cst = arith.constant dense<0.000000e+00> : vector<256x64xf32>
    %2 = tpu.matmul %0, %1, %cst {dimension_numbers = #tpu.dot_dimension_numbers<[1], [0], [0], [1], [0, 0, 1, 1], [], []>} : vector<256x32xf32>, vector<32x64xf32>, vector<256x64xf32> -> vector<256x64xf32>
    %cst_3 = arith.constant 0.000000e+00 : f32
    %3 = vector.broadcast %cst_3 : f32 to vector<256x64xf32>
    %4 = arith.maximumf %2, %3 : vector<256x64xf32>
    %c0_4 = arith.constant 0 : index
    %c0_5 = arith.constant 0 : index
    %5 = vector.load %arg3[%c0_4, %c0_5] : memref<64x64xf32, #tpu.memory_space<vmem>>, vector<64x64xf32>
    %cst_6 = arith.constant dense<0.000000e+00> : vector<256x64xf32>
    %6 = tpu.matmul %4, %5, %cst_6 {dimension_numbers = #tpu.dot_dimension_numbers<[1], [0], [0], [1], [0, 0, 1, 1], [], []>} : vector<256x64xf32>, vector<64x64xf32>, vector<256x64xf32> -> vector<256x64xf32>
    %cst_7 = arith.constant 0.000000e+00 : f32
    %7 = vector.broadcast %cst_7 : f32 to vector<256x64xf32>
    %8 = arith.maximumf %6, %7 : vector<256x64xf32>
    %c0_8 = arith.constant 0 : index
    %c0_9 = arith.constant 0 : index
    %9 = vector.load %arg4[%c0_8, %c0_9] : memref<64x16xf32, #tpu.memory_space<vmem>>, vector<64x16xf32>
    %cst_10 = arith.constant dense<0.000000e+00> : vector<256x16xf32>
    %10 = tpu.matmul %8, %9, %cst_10 {dimension_numbers = #tpu.dot_dimension_numbers<[1], [0], [0], [1], [0, 0, 1, 1], [], []>} : vector<256x64xf32>, vector<64x16xf32>, vector<256x16xf32> -> vector<256x16xf32>
    %c0_11 = arith.constant 0 : index
    %c0_12 = arith.constant 0 : index
    %11 = vector.load %arg5[%c0_11, %c0_12] : memref<256x16xf32, #tpu.memory_space<vmem>>, vector<256x16xf32>
    tpu.vector_store %arg5[%c0_11, %c0_12], %10 {strides = array<i32>} : memref<256x16xf32, #tpu.memory_space<vmem>>, vector<256x16xf32>,
    return
  }
  func.func @transform_0(%arg0: i32) -> (i32, i32) {
    %c0_i32 = arith.constant 0 : i32
    %c0_i32_0 = arith.constant 0 : i32
    return %arg0, %c0_i32 : i32, i32
  }
  func.func @transform_1(%arg0: i32) -> (i32, i32) {
    %c0_i32 = arith.constant 0 : i32
    %c0_i32_0 = arith.constant 0 : i32
    %c0_i32_1 = arith.constant 0 : i32
    return %c0_i32, %c0_i32_0 : i32, i32
  }
  func.func @transform_2(%arg0: i32) -> (i32, i32) {
    %c0_i32 = arith.constant 0 : i32
    %c0_i32_0 = arith.constant 0 : i32
    %c0_i32_1 = arith.constant 0 : i32
    return %c0_i32, %c0_i32_0 : i32, i32
  }
  func.func @transform_3(%arg0: i32) -> (i32, i32) {
    %c0_i32 = arith.constant 0 : i32
    %c0_i32_0 = arith.constant 0 : i32
    %c0_i32_1 = arith.constant 0 : i32
    return %c0_i32, %c0_i32_0 : i32, i32
  }
  func.func @transform_4(%arg0: i32) -> (i32, i32) {
    %c0_i32 = arith.constant 0 : i32
    %c0_i32_0 = arith.constant 0 : i32
    return %arg0, %c0_i32 : i32, i32
  }
}

</mosaic_0001>

<bundles_post_ra>
// kernel: mlp_pallas.1
= control target key start
LH: loop header
LB: loop body
LE: loop exit
PB: predicated region body
PF: predicated region fallthrough
CT: control target
= control target key end

     0   :  { %vm53_vm0 = vcmask 261120   ;;  %vm415_vm1 = vcmask 523264   ;;  %vm1098_vm2 = vcmask 130048   ;;  %s1989_s1 = inlined_call_operand.vmem [shape: f32[32,64], index: 1, kind: input, shape index: {}]   ;;  %s1990_s0 = inlined_call_operand.vmem [shape: f32[256,32], index: 0, kind: input, shape index: {}]   ;;  %s1991_s2 = inlined_call_operand.vmem [shape: f32[64,64], index: 2, kind: input, shape index: {}]   ;;  %s1992_s3 = inlined_call_operand.vmem [shape: f32[64,16], index: 3, kind: input, shape index: {}]   ;;  %s1993_s4 = inlined_call_operand.vmem [shape: f32[256,16], index: 4, kind: output, shape index: {}]  }
   0x1   :  { %v49_v0 = vld [vmem:[%s1989_s1] sm:$0xff]  ;;  %v50_v1 = vld [vmem:[%s1989_s1 + $0x8] sm:$0xff]  ;;  %v51_v2 = vld [vmem:[%s1989_s1 + $0x10] sm:$0xff] }
   0x2   :  { %v1531_v3 = vpack.c.bf16 %v50_v1, %v49_v0  ;;  %v52_v4 = vld [vmem:[%s1989_s1 + $0x18] sm:$0xff]  ;;  %v17_v5 = vld [vmem:[%s1990_s0] sm:$0xff]  ;;  %v18_v8 = vld [vmem:[%s1990_s0 + $0x8] sm:$0xff] }
   0x3   :  { %v1535_v6 = vpack.c.bf16 %v52_v4, %v51_v2  ;;  %1355 = vmatprep.mubr.msk.f32.mxu0 %vm53_vm0, %v17_v5  ;;  %v33_v7 = vld [vmem:[%s1990_s0 + $0x80] sm:$0xff]  ;;  %v34_v9 = vld [vmem:[%s1990_s0 + $0x88] sm:$0xff]  ;;  %v19_v10 = vld [vmem:[%s1990_s0 + $0x10] sm:$0xff] }
   0x4   :  { %1532 = vmatprep.subr.bf16.mxu0 %v1531_v3  ;;  %1571 = vmatprep.subr.bf16.mxu1 %v1531_v3  ;;  %v35_v11 = vld [vmem:[%s1990_s0 + $0x90] sm:$0xff]  ;;  %v20_v12 = vld [vmem:[%s1990_s0 + $0x18] sm:$0xff]  ;;  %v407_v14 = vld [vmem:[%s1991_s2] sm:$0xff] }
   0x5   :  { %1534 = vmatpush3.bf16.msra.mxu0 %v1531_v3  ;;  %1573 = vmatpush3.bf16.msra.mxu1 %v1531_v3  ;;  %v36_v13 = vld [vmem:[%s1990_s0 + $0x98] sm:$0xff]  ;;  %v408_v15 = vld [vmem:[%s1991_s2 + $0x8] sm:$0xff]  ;;  %v21_v16 = vld [vmem:[%s1990_s0 + $0x20] sm:$0xff] }
   0x6   :  { %1536 = vmatprep.subr.bf16.mxu0 %v1535_v6  ;;  %1572 = vmatprep.subr.bf16.mxu1 %v1535_v6  ;;  %v37_v17 = vld [vmem:[%s1990_s0 + $0xa0] sm:$0xff]  ;;  %v1539_v18 = vpack.c.bf16 %v408_v15, %v407_v14  ;;  %v409_v19 = vld [vmem:[%s1991_s2 + $0x10] sm:$0xff]  ;;  %v410_v20 = vld [vmem:[%s1991_s2 + $0x18] sm:$0xff] }
   0x7   :  { %1379 = vmatprep.mubr.msk.f32.mxu1 %vm53_vm0, %v33_v7  ;;  %v22_v21 = vld [vmem:[%s1990_s0 + $0x28] sm:$0xff]  ;;  %v23_v23 = vld [vmem:[%s1990_s0 + $0x30] sm:$0xff]  ;;  %v1543_v25 = vpack.c.bf16 %v410_v20, %v409_v19  ;;  %v411_v26 = vld [vmem:[%s1991_s2 + $0x20] sm:$0xff] }
   0x8   :  { %v38_v22 = vld [vmem:[%s1990_s0 + $0xa8] sm:$0xff]  ;;  %v39_v24 = vld [vmem:[%s1990_s0 + $0xb0] sm:$0xff]  ;;  %v24_v28 = vld [vmem:[%s1990_s0 + $0x38] sm:$0xff] }
   0x9   :  { %1538 = vmatpush3.bf16.msra.mxu0 %v1535_v6  ;;  %1574 = vmatpush3.bf16.msra.mxu1 %v1535_v6  ;;  %v412_v27 = vld [vmem:[%s1991_s2 + $0x28] sm:$0xff]  ;;  %v40_v29 = vld [vmem:[%s1990_s0 + $0xb8] sm:$0xff]  ;;  %v25_v30 = vld [vmem:[%s1990_s0 + $0x40] sm:$0xff] }
   0xa   :  { %1540 = vmatprep.subr.bf16.mxu1 %v1539_v18  ;;  %v41_v31 = vld [vmem:[%s1990_s0 + $0xc0] sm:$0xff]  ;;  %v1547_v32 = vpack.c.bf16 %v412_v27, %v411_v26  ;;  %v413_v33 = vld [vmem:[%s1991_s2 + $0x30] sm:$0xff]  ;;  %v414_v34 = vld [vmem:[%s1991_s2 + $0x38] sm:$0xff] }
   0xb   :  { %v26_v35 = vld [vmem:[%s1990_s0 + $0x48] sm:$0xff]  ;;  %v27_v37 = vld [vmem:[%s1990_s0 + $0x50] sm:$0xff]  ;;  %v1551_v39 = vpack.c.bf16 %v414_v34, %v413_v33  ;;  %v28_v40 = vld [vmem:[%s1990_s0 + $0x58] sm:$0xff] }
   0xc   :  { %1356 = vmatmul.mubr.msk.f32.vlgmr.msra.gmra.mrb[0].mxu0 %vm53_vm0, %v18_v8  ;;  %1380 = vmatmul.mubr.msk.f32.vlgmr.msra.gmra.mrb[0].mxu1 %vm53_vm0, %v34_v9  ;;  %v42_v36 = vld [vmem:[%s1990_s0 + $0xc8] sm:$0xff]  ;;  %v43_v38 = vld [vmem:[%s1990_s0 + $0xd0] sm:$0xff]  ;;  %v44_v41 = vld [vmem:[%s1990_s0 + $0xd8] sm:$0xff] }
   0xd   :  { %1358 = vmatprep.mubr.msk.f32.mxu0 %vm53_vm0, %v19_v10  ;;  %1382 = vmatprep.mubr.msk.f32.mxu1 %vm53_vm0, %v35_v11  ;;  %v29_v42 = vld [vmem:[%s1990_s0 + $0x60] sm:$0xff]  ;;  %v30_v44 = vld [vmem:[%s1990_s0 + $0x68] sm:$0xff]  ;;  %v31_v46 = vld [vmem:[%s1990_s0 + $0x70] sm:$0xff] }
   0xe   :  { %1542 = vmatpush3.bf16.msra.mxu1 %v1539_v18  ;;  %v45_v43 = vld [vmem:[%s1990_s0 + $0xe0] sm:$0xff]  ;;  %v46_v45 = vld [vmem:[%s1990_s0 + $0xe8] sm:$0xff]  ;;  %v47_v47 = vld [vmem:[%s1990_s0 + $0xf0] sm:$0xff] }
   0xf   :  { %1544 = vmatprep.subr.bf16.mxu1 %v1543_v25  ;;  %v32_v48 = vld [vmem:[%s1990_s0 + $0x78] sm:$0xff]  ;;  %v769_v50 = vld [vmem:[%s1992_s3] sm:$0xff]  ;;  %v770_v51 = vld [vmem:[%s1992_s3 + $0x8] sm:$0xff] }
  0x10   :  { %1359 = vmatmul.mubr.msk.f32.gmra.mrb[2].mxu0 %vm53_vm0, %v20_v12  ;;  %1383 = vmatmul.mubr.msk.f32.gmra.mrb[2].mxu1 %vm53_vm0, %v36_v13  ;;  %v48_v49 = vld [vmem:[%s1990_s0 + $0xf8] sm:$0xff]  ;;  %v771_v52 = vld [vmem:[%s1992_s3 + $0x10] sm:$0xff]  ;;  %v1555_v53 = vpack.c.bf16 %v770_v51, %v769_v50  ;;  %v773_v56 = vld [vmem:[%s1992_s3 + $0x20] sm:$0xff] }
  0x11   :  { %1361 = vmatprep.mubr.msk.f32.mxu0 %vm53_vm0, %v21_v16  ;;  %1385 = vmatprep.mubr.msk.f32.mxu1 %vm53_vm0, %v37_v17  ;;  %v772_v54 = vld [vmem:[%s1992_s3 + $0x18] sm:$0xff]  ;;  %v774_v57 = vld [vmem:[%s1992_s3 + $0x28] sm:$0xff]  ;;  %v775_v59 = vld [vmem:[%s1992_s3 + $0x30] sm:$0xff] }
  0x12   :  { %1546 = vmatpush3.bf16.msra.mxu1 %v1543_v25  ;;  %v1559_v55 = vpack.c.bf16 %v772_v54, %v771_v52  ;;  %1556 = vmatprep.subr.bf16.mxu0 %v1555_v53  ;;  %v1563_v58 = vpack.c.bf16 %v774_v57, %v773_v56  ;;  %v776_v60 = vld [vmem:[%s1992_s3 + $0x38] sm:$0xff] }
  0x13   :  { %1548 = vmatprep.subr.bf16.mxu1 %v1547_v32  ;;  %1558 = vmatpush3.bf16.msra.mxu0 %v1555_v53  ;;  %v1567_v61 = vpack.c.bf16 %v776_v60, %v775_v59 }
  0x14   :  { %1362 = vmatmul.mubr.msk.f32.gmra.mrb[4].mxu0 %vm53_vm0, %v22_v21  ;;  %1386 = vmatmul.mubr.msk.f32.gmra.mrb[4].mxu1 %vm53_vm0, %v38_v22 }
  0x15   :  { %1364 = vmatprep.mubr.msk.f32.mxu0 %vm53_vm0, %v23_v23  ;;  %1388 = vmatprep.mubr.msk.f32.mxu1 %vm53_vm0, %v39_v24 }
  0x16   :  { %1550 = vmatpush3.bf16.msra.mxu1 %v1547_v32  ;;  %1560 = vmatprep.subr.bf16.mxu0 %v1559_v55 }
  0x17   :  { %1552 = vmatprep.subr.bf16.mxu1 %v1551_v39  ;;  %1562 = vmatpush3.bf16.msra.mxu0 %v1559_v55 }
  0x18   :  { %1365 = vmatmul.mubr.msk.f32.gmra.mrb[6].mxu0 %vm53_vm0, %v24_v28  ;;  %1389 = vmatmul.mubr.msk.f32.gmra.mrb[6].mxu1 %vm53_vm0, %v40_v29 }
  0x19   :  { %1367 = vmatprep.mubr.msk.f32.mxu0 %vm53_vm0, %v25_v30  ;;  %1391 = vmatprep.mubr.msk.f32.mxu1 %vm53_vm0, %v41_v31 }
  0x1a   :  { %1554 = vmatpush3.bf16.msra.mxu1 %v1551_v39  ;;  %1564 = vmatprep.subr.bf16.mxu0 %v1563_v58 }
  0x1b   :  { %1566 = vmatpush3.bf16.msra.mxu0 %v1563_v58 }
  0x1c   :  { %1368 = vmatmul.mubr.msk.f32.gmra.mrb[8].mxu0 %vm53_vm0, %v26_v35  ;;  %1392 = vmatmul.mubr.msk.f32.gmra.mrb[8].mxu1 %vm53_vm0, %v42_v36 }
  0x1d   :  { %1370 = vmatprep.mubr.msk.f32.mxu0 %vm53_vm0, %v27_v37  ;;  %1394 = vmatprep.mubr.msk.f32.mxu1 %vm53_vm0, %v43_v38 }
  0x1e   :  { %1568 = vmatprep.subr.bf16.mxu0 %v1567_v61 }
  0x1f   :  { %1570 = vmatpush3.bf16.msra.mxu0 %v1567_v61 }
  0x20   :  { %1371 = vmatmul.mubr.msk.f32.gmra.mrb[10].mxu0 %vm53_vm0, %v28_v40  ;;  %1395 = vmatmul.mubr.msk.f32.gmra.mrb[10].mxu1 %vm53_vm0, %v44_v41 }
  0x21   :  { %1373 = vmatprep.mubr.msk.f32.mxu0 %vm53_vm0, %v29_v42  ;;  %1397 = vmatprep.mubr.msk.f32.mxu1 %vm53_vm0, %v45_v43 }
  0x24   :  { %1374 = vmatmul.mubr.msk.f32.gmra.mrb[12].mxu0 %vm53_vm0, %v30_v44  ;;  %1398 = vmatmul.mubr.msk.f32.gmra.mrb[12].mxu1 %vm53_vm0, %v46_v45 }
  0x25   :  { %1376 = vmatprep.mubr.msk.f32.mxu0 %vm53_vm0, %v31_v46  ;;  %1400 = vmatprep.mubr.msk.f32.mxu1 %vm53_vm0, %v47_v47 }
  0x28   :  { %1377 = vmatmul.mubr.msk.f32.gmra.mrb[14].mxu0 %vm53_vm0, %v32_v48  ;;  %1401 = vmatmul.mubr.msk.f32.gmra.mrb[14].mxu1 %vm53_vm0, %v48_v49 }
  0xdf   :  { %v1357_v62 = vpop.f32.mrb[0].mxu0  ;;  %v1788_v63 = vpop.f32.mrb[0].mxu1 }
  0xe0   :  { %v216_v0 = vpop.f32.mrb[1].mxu0  ;;  %v1790_v1 = vpop.f32.mrb[1].mxu1  ;;  %v376_v3 = vmax.f32 %v1357_v62, 0.0  ;;  %v392_v48 = vmax.f32 %v1788_v63, 0.0 }
  0xe1   :  { %v375_v2 = vmax.f32 %v216_v0, 0.0  ;;  %v391_v45 = vmax.f32 %v1790_v1, 0.0 }
  0xe3   :  { %v1360_v4 = vpop.f32.mrb[2].mxu0  ;;  %1419 = vmatprep.mubr.msk.f32.mxu1 %vm415_vm1, %v375_v2  ;;  %v1793_v5 = vpop.f32.mrb[2].mxu1 }
  0xe4   :  { %v226_v6 = vpop.f32.mrb[3].mxu0  ;;  %1420 = vmatmul.mubr.msk.f32.vlgmr.msra.gmra.mrb[16].mxu1 %vm415_vm1, %v376_v3  ;;  %v306_v7 = vpop.f32.mrb[3].mxu1  ;;  %v378_v9 = vmax.f32 %v1360_v4, 0.0  ;;  %v394_v50 = vmax.f32 %v1793_v5, 0.0 }
  0xe5   :  { %v377_v8 = vmax.f32 %v226_v6, 0.0  ;;  %v393_v47 = vmax.f32 %v306_v7, 0.0 }
  0xe7   :  { %v1363_v10 = vpop.f32.mrb[4].mxu0  ;;  %1422 = vmatprep.mubr.msk.f32.mxu1 %vm415_vm1, %v377_v8  ;;  %v1387_v11 = vpop.f32.mrb[4].mxu1 }
  0xe8   :  { %v236_v12 = vpop.f32.mrb[5].mxu0  ;;  %1423 = vmatmul.mubr.msk.f32.gmra.mrb[18].mxu1 %vm415_vm1, %v378_v9  ;;  %v316_v13 = vpop.f32.mrb[5].mxu1  ;;  %v380_v15 = vmax.f32 %v1363_v10, 0.0  ;;  %v396_v52 = vmax.f32 %v1387_v11, 0.0 }
  0xe9   :  { %v379_v14 = vmax.f32 %v236_v12, 0.0  ;;  %v395_v49 = vmax.f32 %v316_v13, 0.0 }
  0xeb   :  { %v1366_v16 = vpop.f32.mrb[6].mxu0  ;;  %1425 = vmatprep.mubr.msk.f32.mxu1 %vm415_vm1, %v379_v14  ;;  %v1390_v17 = vpop.f32.mrb[6].mxu1 }
  0xec   :  { %v246_v18 = vpop.f32.mrb[7].mxu0  ;;  %1426 = vmatmul.mubr.msk.f32.gmra.mrb[20].mxu1 %vm415_vm1, %v380_v15  ;;  %v326_v19 = vpop.f32.mrb[7].mxu1  ;;  %v382_v21 = vmax.f32 %v1366_v16, 0.0  ;;  %v398_v54 = vmax.f32 %v1390_v17, 0.0 }
  0xed   :  { %v381_v20 = vmax.f32 %v246_v18, 0.0  ;;  %v397_v51 = vmax.f32 %v326_v19, 0.0 }
  0xef   :  { %v1369_v22 = vpop.f32.mrb[8].mxu0  ;;  %1428 = vmatprep.mubr.msk.f32.mxu1 %vm415_vm1, %v381_v20  ;;  %v1393_v23 = vpop.f32.mrb[8].mxu1 }
  0xf0   :  { %v256_v24 = vpop.f32.mrb[9].mxu0  ;;  %1429 = vmatmul.mubr.msk.f32.gmra.mrb[22].mxu1 %vm415_vm1, %v382_v21  ;;  %v336_v25 = vpop.f32.mrb[9].mxu1  ;;  %v384_v27 = vmax.f32 %v1369_v22, 0.0  ;;  %v400_v56 = vmax.f32 %v1393_v23, 0.0 }
  0xf1   :  { %v383_v26 = vmax.f32 %v256_v24, 0.0  ;;  %v399_v53 = vmax.f32 %v336_v25, 0.0 }
  0xf3   :  { %v1372_v28 = vpop.f32.mrb[10].mxu0  ;;  %1431 = vmatprep.mubr.msk.f32.mxu1 %vm415_vm1, %v383_v26  ;;  %v1396_v29 = vpop.f32.mrb[10].mxu1 }
  0xf4   :  { %v266_v30 = vpop.f32.mrb[11].mxu0  ;;  %1432 = vmatmul.mubr.msk.f32.gmra.mrb[24].mxu1 %vm415_vm1, %v384_v27  ;;  %v346_v31 = vpop.f32.mrb[11].mxu1  ;;  %v386_v33 = vmax.f32 %v1372_v28, 0.0  ;;  %v402_v58 = vmax.f32 %v1396_v29, 0.0 }
  0xf5   :  { %v385_v32 = vmax.f32 %v266_v30, 0.0  ;;  %v401_v55 = vmax.f32 %v346_v31, 0.0 }
  0xf7   :  { %v1375_v34 = vpop.f32.mrb[12].mxu0  ;;  %1434 = vmatprep.mubr.msk.f32.mxu1 %vm415_vm1, %v385_v32  ;;  %v1399_v35 = vpop.f32.mrb[12].mxu1 }
  0xf8   :  { %v276_v36 = vpop.f32.mrb[13].mxu0  ;;  %1435 = vmatmul.mubr.msk.f32.gmra.mrb[26].mxu1 %vm415_vm1, %v386_v33  ;;  %v356_v37 = vpop.f32.mrb[13].mxu1  ;;  %v388_v39 = vmax.f32 %v1375_v34, 0.0  ;;  %v404_v60 = vmax.f32 %v1399_v35, 0.0 }
  0xf9   :  { %v387_v38 = vmax.f32 %v276_v36, 0.0  ;;  %v403_v57 = vmax.f32 %v356_v37, 0.0 }
  0xfb   :  { %v1378_v40 = vpop.f32.mrb[14].mxu0  ;;  %1437 = vmatprep.mubr.msk.f32.mxu1 %vm415_vm1, %v387_v38  ;;  %v1402_v41 = vpop.f32.mrb[14].mxu1 }
  0xfc   :  { %v286_v42 = vpop.f32.mrb[15].mxu0  ;;  %1438 = vmatmul.mubr.msk.f32.gmra.mrb[28].mxu1 %vm415_vm1, %v388_v39  ;;  %v366_v43 = vpop.f32.mrb[15].mxu1  ;;  %v390_v46 = vmax.f32 %v1378_v40, 0.0  ;;  %v406_v61 = vmax.f32 %v1402_v41, 0.0 }
  0xfd   :  { %v389_v44 = vmax.f32 %v286_v42, 0.0  ;;  %v405_v59 = vmax.f32 %v366_v43, 0.0 }
  0xff   :  { %1440 = vmatprep.mubr.msk.f32.mxu1 %vm415_vm1, %v389_v44 }
 0x100   :  { %1441 = vmatmul.mubr.msk.f32.gmra.mrb[30].mxu1 %vm415_vm1, %v390_v46 }
 0x101   :  { %1443 = vmatprep.mubr.msk.f32.mxu1 %vm415_vm1, %v391_v45 }
 0x104   :  { %1444 = vmatmul.mubr.msk.f32.gmra.mrb[32].mxu1 %vm415_vm1, %v392_v48 }
 0x105   :  { %1446 = vmatprep.mubr.msk.f32.mxu1 %vm415_vm1, %v393_v47 }
 0x108   :  { %1447 = vmatmul.mubr.msk.f32.gmra.mrb[34].mxu1 %vm415_vm1, %v394_v50 }
 0x109   :  { %1449 = vmatprep.mubr.msk.f32.mxu1 %vm415_vm1, %v395_v49 }
 0x10c   :  { %1450 = vmatmul.mubr.msk.f32.gmra.mrb[36].mxu1 %vm415_vm1, %v396_v52 }
 0x10d   :  { %1452 = vmatprep.mubr.msk.f32.mxu1 %vm415_vm1, %v397_v51 }
 0x110   :  { %1453 = vmatmul.mubr.msk.f32.gmra.mrb[38].mxu1 %vm415_vm1, %v398_v54 }
 0x111   :  { %1455 = vmatprep.mubr.msk.f32.mxu1 %vm415_vm1, %v399_v53 }
 0x114   :  { %1456 = vmatmul.mubr.msk.f32.gmra.mrb[40].mxu1 %vm415_vm1, %v400_v56 }
 0x115   :  { %1458 = vmatprep.mubr.msk.f32.mxu1 %vm415_vm1, %v401_v55 }
 0x118   :  { %1459 = vmatmul.mubr.msk.f32.gmra.mrb[42].mxu1 %vm415_vm1, %v402_v58 }
 0x119   :  { %1461 = vmatprep.mubr.msk.f32.mxu1 %vm415_vm1, %v403_v57 }
 0x11c   :  { %1462 = vmatmul.mubr.msk.f32.gmra.mrb[44].mxu1 %vm415_vm1, %v404_v60 }
 0x11d   :  { %1464 = vmatprep.mubr.msk.f32.mxu1 %vm415_vm1, %v405_v59 }
 0x120   :  { %1465 = vmatmul.mubr.msk.f32.gmra.mrb[46].mxu1 %vm415_vm1, %v406_v61 }
 0x1b7   :  { %v1421_v62 = vpop.f32.mrb[16].mxu1 }
 0x1b8   :  { %v578_v63 = vpop.f32.mrb[17].mxu1  ;;  %v738_v1 = vmax.f32 %v1421_v62, 0.0 }
 0x1b9   :  { %v737_v0 = vmax.f32 %v578_v63, 0.0 }
 0x1bb   :  { %v1424_v2 = vpop.f32.mrb[18].mxu1  ;;  %1483 = vmatprep.mubr.msk.f32.mxu0 %vm415_vm1, %v737_v0 }
 0x1bc   :  { %v588_v3 = vpop.f32.mrb[19].mxu1  ;;  %1484 = vmatmul.mubr.msk.f32.vlgmr.msra.gmra.mrb[16].mxu0 %vm415_vm1, %v738_v1  ;;  %v740_v5 = vmax.f32 %v1424_v2, 0.0 }
 0x1bd   :  { %v739_v4 = vmax.f32 %v588_v3, 0.0 }
 0x1bf   :  { %v1427_v6 = vpop.f32.mrb[20].mxu1  ;;  %1486 = vmatprep.mubr.msk.f32.mxu0 %vm415_vm1, %v739_v4 }
 0x1c0   :  { %v598_v7 = vpop.f32.mrb[21].mxu1  ;;  %1487 = vmatmul.mubr.msk.f32.gmra.mrb[18].mxu0 %vm415_vm1, %v740_v5  ;;  %v742_v9 = vmax.f32 %v1427_v6, 0.0 }
 0x1c1   :  { %v741_v8 = vmax.f32 %v598_v7, 0.0 }
 0x1c3   :  { %v1430_v10 = vpop.f32.mrb[22].mxu1  ;;  %1489 = vmatprep.mubr.msk.f32.mxu0 %vm415_vm1, %v741_v8 }
 0x1c4   :  { %v608_v11 = vpop.f32.mrb[23].mxu1  ;;  %1490 = vmatmul.mubr.msk.f32.gmra.mrb[20].mxu0 %vm415_vm1, %v742_v9  ;;  %v744_v13 = vmax.f32 %v1430_v10, 0.0 }
 0x1c5   :  { %v743_v12 = vmax.f32 %v608_v11, 0.0 }
 0x1c7   :  { %v1433_v14 = vpop.f32.mrb[24].mxu1  ;;  %1492 = vmatprep.mubr.msk.f32.mxu0 %vm415_vm1, %v743_v12 }
 0x1c8   :  { %v618_v15 = vpop.f32.mrb[25].mxu1  ;;  %1493 = vmatmul.mubr.msk.f32.gmra.mrb[22].mxu0 %vm415_vm1, %v744_v13  ;;  %v746_v17 = vmax.f32 %v1433_v14, 0.0 }
 0x1c9   :  { %v745_v16 = vmax.f32 %v618_v15, 0.0 }
 0x1cb   :  { %v1436_v18 = vpop.f32.mrb[26].mxu1  ;;  %1495 = vmatprep.mubr.msk.f32.mxu0 %vm415_vm1, %v745_v16 }
 0x1cc   :  { %v628_v19 = vpop.f32.mrb[27].mxu1  ;;  %1496 = vmatmul.mubr.msk.f32.gmra.mrb[24].mxu0 %vm415_vm1, %v746_v17  ;;  %v748_v21 = vmax.f32 %v1436_v18, 0.0 }
 0x1cd   :  { %v747_v20 = vmax.f32 %v628_v19, 0.0 }
 0x1cf   :  { %v1439_v22 = vpop.f32.mrb[28].mxu1  ;;  %1498 = vmatprep.mubr.msk.f32.mxu0 %vm415_vm1, %v747_v20 }
 0x1d0   :  { %v638_v23 = vpop.f32.mrb[29].mxu1  ;;  %1499 = vmatmul.mubr.msk.f32.gmra.mrb[26].mxu0 %vm415_vm1, %v748_v21  ;;  %v750_v25 = vmax.f32 %v1439_v22, 0.0 }
 0x1d1   :  { %v749_v24 = vmax.f32 %v638_v23, 0.0 }
 0x1d3   :  { %v1442_v26 = vpop.f32.mrb[30].mxu1  ;;  %1501 = vmatprep.mubr.msk.f32.mxu0 %vm415_vm1, %v749_v24 }
 0x1d4   :  { %v648_v27 = vpop.f32.mrb[31].mxu1  ;;  %1502 = vmatmul.mubr.msk.f32.gmra.mrb[28].mxu0 %vm415_vm1, %v750_v25  ;;  %v752_v29 = vmax.f32 %v1442_v26, 0.0 }
 0x1d5   :  { %v751_v28 = vmax.f32 %v648_v27, 0.0 }
 0x1d7   :  { %v1445_v30 = vpop.f32.mrb[32].mxu1  ;;  %1504 = vmatprep.mubr.msk.f32.mxu0 %vm415_vm1, %v751_v28 }
 0x1d8   :  { %v658_v31 = vpop.f32.mrb[33].mxu1  ;;  %1505 = vmatmul.mubr.msk.f32.gmra.mrb[30].mxu0 %vm415_vm1, %v752_v29  ;;  %v754_v33 = vmax.f32 %v1445_v30, 0.0 }
 0x1d9   :  { %v753_v32 = vmax.f32 %v658_v31, 0.0 }
 0x1db   :  { %v1448_v34 = vpop.f32.mrb[34].mxu1  ;;  %1507 = vmatprep.mubr.msk.f32.mxu0 %vm415_vm1, %v753_v32 }
 0x1dc   :  { %v668_v35 = vpop.f32.mrb[35].mxu1  ;;  %1508 = vmatmul.mubr.msk.f32.gmra.mrb[32].mxu0 %vm415_vm1, %v754_v33  ;;  %v756_v37 = vmax.f32 %v1448_v34, 0.0 }
 0x1dd   :  { %v755_v36 = vmax.f32 %v668_v35, 0.0 }
 0x1df   :  { %v1451_v38 = vpop.f32.mrb[36].mxu1  ;;  %1510 = vmatprep.mubr.msk.f32.mxu0 %vm415_vm1, %v755_v36 }
 0x1e0   :  { %v678_v39 = vpop.f32.mrb[37].mxu1  ;;  %1511 = vmatmul.mubr.msk.f32.gmra.mrb[34].mxu0 %vm415_vm1, %v756_v37  ;;  %v758_v41 = vmax.f32 %v1451_v38, 0.0 }
 0x1e1   :  { %v757_v40 = vmax.f32 %v678_v39, 0.0 }
 0x1e3   :  { %v1454_v42 = vpop.f32.mrb[38].mxu1  ;;  %1513 = vmatprep.mubr.msk.f32.mxu0 %vm415_vm1, %v757_v40 }
 0x1e4   :  { %v688_v43 = vpop.f32.mrb[39].mxu1  ;;  %1514 = vmatmul.mubr.msk.f32.gmra.mrb[36].mxu0 %vm415_vm1, %v758_v41  ;;  %v760_v45 = vmax.f32 %v1454_v42, 0.0 }
 0x1e5   :  { %v759_v44 = vmax.f32 %v688_v43, 0.0 }
 0x1e7   :  { %v1457_v46 = vpop.f32.mrb[40].mxu1  ;;  %1516 = vmatprep.mubr.msk.f32.mxu0 %vm415_vm1, %v759_v44 }
 0x1e8   :  { %v698_v47 = vpop.f32.mrb[41].mxu1  ;;  %1517 = vmatmul.mubr.msk.f32.gmra.mrb[38].mxu0 %vm415_vm1, %v760_v45  ;;  %v762_v49 = vmax.f32 %v1457_v46, 0.0 }
 0x1e9   :  { %v761_v48 = vmax.f32 %v698_v47, 0.0 }
 0x1eb   :  { %v1460_v50 = vpop.f32.mrb[42].mxu1  ;;  %1519 = vmatprep.mubr.msk.f32.mxu0 %vm415_vm1, %v761_v48 }
 0x1ec   :  { %v708_v51 = vpop.f32.mrb[43].mxu1  ;;  %1520 = vmatmul.mubr.msk.f32.gmra.mrb[40].mxu0 %vm415_vm1, %v762_v49  ;;  %v764_v53 = vmax.f32 %v1460_v50, 0.0 }
 0x1ed   :  { %v763_v52 = vmax.f32 %v708_v51, 0.0 }
 0x1ef   :  { %v1463_v54 = vpop.f32.mrb[44].mxu1  ;;  %1522 = vmatprep.mubr.msk.f32.mxu0 %vm415_vm1, %v763_v52 }
 0x1f0   :  { %v718_v55 = vpop.f32.mrb[45].mxu1  ;;  %1523 = vmatmul.mubr.msk.f32.gmra.mrb[42].mxu0 %vm415_vm1, %v764_v53  ;;  %v766_v57 = vmax.f32 %v1463_v54, 0.0 }
 0x1f1   :  { %v765_v56 = vmax.f32 %v718_v55, 0.0 }
 0x1f3   :  { %v1466_v58 = vpop.f32.mrb[46].mxu1  ;;  %1525 = vmatprep.mubr.msk.f32.mxu0 %vm415_vm1, %v765_v56 }
 0x1f4   :  { %v728_v59 = vpop.f32.mrb[47].mxu1  ;;  %1526 = vmatmul.mubr.msk.f32.gmra.mrb[44].mxu0 %vm415_vm1, %v766_v57  ;;  %v768_v61 = vmax.f32 %v1466_v58, 0.0 }
 0x1f5   :  { %v767_v60 = vmax.f32 %v728_v59, 0.0 }
 0x1f7   :  { %1528 = vmatprep.mubr.msk.f32.mxu0 %vm415_vm1, %v767_v60 }
 0x1f8   :  { %1529 = vmatmul.mubr.msk.f32.gmra.mrb[46].mxu0 %vm415_vm1, %v768_v61 }
 0x28f   :  { %v1485_v62 = vpop.f32.mrb[16].mxu0 }
 0x290   :  { %1100 = vst.msk [vmem:[%s1993_s4 + $0x8] sm:$0xff] %vm1098_vm2, %v1485_v62  ;;  %v939_v63 = vpop.f32.mrb[17].mxu0 }
 0x291   :  { %1099 = vst.msk [vmem:[%s1993_s4] sm:$0xff] %vm1098_vm2, %v939_v63 }
 0x293   :  { %v1488_v0 = vpop.f32.mrb[18].mxu0 }
 0x294   :  { %1102 = vst.msk [vmem:[%s1993_s4 + $0x18] sm:$0xff] %vm1098_vm2, %v1488_v0  ;;  %v949_v1 = vpop.f32.mrb[19].mxu0 }
 0x295   :  { %1101 = vst.msk [vmem:[%s1993_s4 + $0x10] sm:$0xff] %vm1098_vm2, %v949_v1 }
 0x297   :  { %v1491_v2 = vpop.f32.mrb[20].mxu0 }
 0x298   :  { %1104 = vst.msk [vmem:[%s1993_s4 + $0x28] sm:$0xff] %vm1098_vm2, %v1491_v2  ;;  %v959_v3 = vpop.f32.mrb[21].mxu0 }
 0x299   :  { %1103 = vst.msk [vmem:[%s1993_s4 + $0x20] sm:$0xff] %vm1098_vm2, %v959_v3 }
 0x29b   :  { %v1494_v4 = vpop.f32.mrb[22].mxu0 }
 0x29c   :  { %1106 = vst.msk [vmem:[%s1993_s4 + $0x38] sm:$0xff] %vm1098_vm2, %v1494_v4  ;;  %v969_v5 = vpop.f32.mrb[23].mxu0 }
 0x29d   :  { %1105 = vst.msk [vmem:[%s1993_s4 + $0x30] sm:$0xff] %vm1098_vm2, %v969_v5 }
 0x29f   :  { %v1497_v6 = vpop.f32.mrb[24].mxu0 }
 0x2a0   :  { %1108 = vst.msk [vmem:[%s1993_s4 + $0x48] sm:$0xff] %vm1098_vm2, %v1497_v6  ;;  %v979_v7 = vpop.f32.mrb[25].mxu0 }
 0x2a1   :  { %1107 = vst.msk [vmem:[%s1993_s4 + $0x40] sm:$0xff] %vm1098_vm2, %v979_v7 }
 0x2a3   :  { %v1500_v8 = vpop.f32.mrb[26].mxu0 }
 0x2a4   :  { %1110 = vst.msk [vmem:[%s1993_s4 + $0x58] sm:$0xff] %vm1098_vm2, %v1500_v8  ;;  %v989_v9 = vpop.f32.mrb[27].mxu0 }
 0x2a5   :  { %1109 = vst.msk [vmem:[%s1993_s4 + $0x50] sm:$0xff] %vm1098_vm2, %v989_v9 }
 0x2a7   :  { %v1503_v10 = vpop.f32.mrb[28].mxu0 }
 0x2a8   :  { %1112 = vst.msk [vmem:[%s1993_s4 + $0x68] sm:$0xff] %vm1098_vm2, %v1503_v10  ;;  %v999_v11 = vpop.f32.mrb[29].mxu0 }
 0x2a9   :  { %1111 = vst.msk [vmem:[%s1993_s4 + $0x60] sm:$0xff] %vm1098_vm2, %v999_v11 }
 0x2ab   :  { %v1506_v12 = vpop.f32.mrb[30].mxu0 }
 0x2ac   :  { %1114 = vst.msk [vmem:[%s1993_s4 + $0x78] sm:$0xff] %vm1098_vm2, %v1506_v12  ;;  %v1009_v13 = vpop.f32.mrb[31].mxu0 }
 0x2ad   :  { %1113 = vst.msk [vmem:[%s1993_s4 + $0x70] sm:$0xff] %vm1098_vm2, %v1009_v13 }
 0x2af   :  { %v1509_v14 = vpop.f32.mrb[32].mxu0 }
 0x2b0   :  { %1116 = vst.msk [vmem:[%s1993_s4 + $0x88] sm:$0xff] %vm1098_vm2, %v1509_v14  ;;  %v1019_v15 = vpop.f32.mrb[33].mxu0 }
 0x2b1   :  { %1115 = vst.msk [vmem:[%s1993_s4 + $0x80] sm:$0xff] %vm1098_vm2, %v1019_v15 }
 0x2b3   :  { %v1512_v16 = vpop.f32.mrb[34].mxu0 }
 0x2b4   :  { %1118 = vst.msk [vmem:[%s1993_s4 + $0x98] sm:$0xff] %vm1098_vm2, %v1512_v16  ;;  %v1029_v17 = vpop.f32.mrb[35].mxu0 }
 0x2b5   :  { %1117 = vst.msk [vmem:[%s1993_s4 + $0x90] sm:$0xff] %vm1098_vm2, %v1029_v17 }
 0x2b7   :  { %v1515_v18 = vpop.f32.mrb[36].mxu0 }
 0x2b8   :  { %1120 = vst.msk [vmem:[%s1993_s4 + $0xa8] sm:$0xff] %vm1098_vm2, %v1515_v18  ;;  %v1039_v19 = vpop.f32.mrb[37].mxu0 }
 0x2b9   :  { %1119 = vst.msk [vmem:[%s1993_s4 + $0xa0] sm:$0xff] %vm1098_vm2, %v1039_v19 }
 0x2bb   :  { %v1518_v20 = vpop.f32.mrb[38].mxu0 }
 0x2bc   :  { %1122 = vst.msk [vmem:[%s1993_s4 + $0xb8] sm:$0xff] %vm1098_vm2, %v1518_v20  ;;  %v1049_v21 = vpop.f32.mrb[39].mxu0 }
 0x2bd   :  { %1121 = vst.msk [vmem:[%s1993_s4 + $0xb0] sm:$0xff] %vm1098_vm2, %v1049_v21 }
 0x2bf   :  { %v1521_v22 = vpop.f32.mrb[40].mxu0 }
 0x2c0   :  { %1124 = vst.msk [vmem:[%s1993_s4 + $0xc8] sm:$0xff] %vm1098_vm2, %v1521_v22  ;;  %v1059_v23 = vpop.f32.mrb[41].mxu0 }
 0x2c1   :  { %1123 = vst.msk [vmem:[%s1993_s4 + $0xc0] sm:$0xff] %vm1098_vm2, %v1059_v23 }
 0x2c3   :  { %v1524_v24 = vpop.f32.mrb[42].mxu0 }
 0x2c4   :  { %1126 = vst.msk [vmem:[%s1993_s4 + $0xd8] sm:$0xff] %vm1098_vm2, %v1524_v24  ;;  %v1069_v25 = vpop.f32.mrb[43].mxu0 }
 0x2c5   :  { %1125 = vst.msk [vmem:[%s1993_s4 + $0xd0] sm:$0xff] %vm1098_vm2, %v1069_v25 }
 0x2c7   :  { %v1527_v26 = vpop.f32.mrb[44].mxu0 }
 0x2c8   :  { %1128 = vst.msk [vmem:[%s1993_s4 + $0xe8] sm:$0xff] %vm1098_vm2, %v1527_v26  ;;  %v1079_v27 = vpop.f32.mrb[45].mxu0 }
 0x2c9   :  { %1127 = vst.msk [vmem:[%s1993_s4 + $0xe0] sm:$0xff] %vm1098_vm2, %v1079_v27 }
 0x2cb   :  { %v1530_v28 = vpop.f32.mrb[46].mxu0 }
 0x2cc   :  { %1130 = vst.msk [vmem:[%s1993_s4 + $0xf8] sm:$0xff] %vm1098_vm2, %v1530_v28  ;;  %v1089_v29 = vpop.f32.mrb[47].mxu0 }
 0x2cd   :  { %1129 = vst.msk [vmem:[%s1993_s4 + $0xf0] sm:$0xff] %vm1098_vm2, %v1089_v29 }

</bundles_post_ra>
